<compile_context>
chip_gen: v6e
topology: v6e:2x2x1
jax: 0.10.0
libtpu: 0.0.40
codegen_flags: <defaults>
</compile_context>

<pallas_src>
import jax
import jax.numpy as jnp
from jax.experimental import pallas as pl
from jax.experimental.pallas import tpu as pltpu

NUM_CLASSES = 8            # semantic classes predicted by the decoder
HIDDEN = 32                # backbone feature channels
N_HEAD = NUM_CLASSES + 3   # sem (NC) + center (1) + offset (2)
LANE = 128                 # TPU lane width


def _round_up(x, m):
    return (x + m - 1) // m * m


def _tile_params():
    """Generation-aware (max pixels per tile, vmem_limit_bytes)."""
    try:
        info = pltpu.get_tpu_info()
        vmem_bytes = getattr(info, "vmem_capacity_bytes", 64 * 1024 * 1024)
    except Exception:  # no TPU visible (e.g. interpret mode on CPU) -> conservative
        vmem_bytes = 64 * 1024 * 1024
    if vmem_bytes >= 100 * 1024 * 1024:       # v5e / v6e: 128 MiB physical VMEM
        return 131072, 96 * 1024 * 1024
    return 65536, 48 * 1024 * 1024            # v7x (64 MiB per TC) and default


def _pick_tile(B, HW, max_tm):
    tm = min(max_tm, _round_up(HW, LANE))
    if tm >= HW:
        tm = HW                               # single exact block (last dim == full dim)
    # v7x has 2 TensorCores: make sure the ("parallel","parallel") grid has >= 2 blocks.
    if B * pl.cdiv(HW, tm) < 2 and HW > 2 * LANE:
        tm = _round_up(pl.cdiv(HW, 2), LANE)
    return tm


def _sigais_kernel(img_ref, map_ref, wbi_ref, wbm_ref, bb_ref, wh_ref, bh_ref,
                   sem_ref, center_ref, offset_ref, prob_ref):
    # Channel-major, lane-dense: pixels live on the 128-wide lane axis.
    #   img_ref/map_ref : [C, TM]        (bf16 or f32; normalization folded into weights)
    #   wbi/wbm         : [HIDDEN, C]    f32, pre-scaled by 1/pixel_std
    #   bb              : [HIDDEN, 1]    f32, mean shift folded in
    #   wh              : [N_HEAD, HIDDEN]
    #   bh              : [N_HEAD, 1]
    x_img = img_ref[...].astype(jnp.float32)
    x_map = map_ref[...].astype(jnp.float32)
    feat = (jnp.dot(wbi_ref[...], x_img, preferred_element_type=jnp.float32)
            + jnp.dot(wbm_ref[...], x_map, preferred_element_type=jnp.float32)
            + bb_ref[...])                                    # [HIDDEN, TM]
    feat = jnp.maximum(feat, 0.0)                             # ReLU

    heads = (jnp.dot(wh_ref[...], feat, preferred_element_type=jnp.float32)
             + bh_ref[...])                                   # [N_HEAD, TM]

    # semantic softmax over the class axis (sublane reduction -> XLU)
    sem = heads[:NUM_CLASSES, :]                              # [NUM_CLASSES, TM]
    m = jnp.max(sem, axis=0, keepdims=True)
    e = jnp.exp(sem - m)
    denom = jnp.sum(e, axis=0, keepdims=True)
    prob = e * pl.reciprocal(denom, approx=True)              # EUP slot, ~free

    sem_ref[...] = sem.astype(sem_ref.dtype)
    center_ref[...] = heads[NUM_CLASSES:NUM_CLASSES + 1, :].astype(center_ref.dtype)
    offset_ref[...] = heads[NUM_CLASSES + 1:, :].astype(offset_ref.dtype)
    prob_ref[...] = prob.astype(prob_ref.dtype)               # bf16 store (half writes)


@jax.jit
def sigais_forward(image, maps, pixel_mean, pixel_std,
                   w_backbone_img, w_backbone_map, b_backbone,
                   w_head, b_head):
    """image, maps: [B, 3, H, W] raw 0-255 pixels, NCHW; f32 or bf16.

    Returns (sem_seg f32, center f32, offset f32, semantic_prob bf16), all NCHW.
    """
    B, C, H, W = image.shape
    HW = H * W
    max_tm, vmem_limit = _tile_params()
    tm = _pick_tile(B, HW, max_tm)

    # NCHW -> [B, C, H*W]: free reshape. No pad, no cast -> no extra HBM traffic.
    img = image.reshape(B, C, HW)
    mp = maps.reshape(B, C, HW)

    # Fold (x - mean) / std into the pointwise backbone weights and bias:
    #   feat = (W_i/s)^T x_i + (W_m/s)^T x_m + (b - (mean/s) @ (W_i + W_m))
    f32 = jnp.float32
    inv_std = (1.0 / pixel_std.astype(f32)).reshape(C, 1)
    mean = pixel_mean.astype(f32).reshape(C)
    w_bi = w_backbone_img.astype(f32)
    w_bm = w_backbone_map.astype(f32)
    wbi_t = (w_bi * inv_std).T                                   # [HIDDEN, C]
    wbm_t = (w_bm * inv_std).T                                   # [HIDDEN, C]
    bb_fold = b_backbone.astype(f32) - (mean * inv_std[:, 0]) @ (w_bi + w_bm)
    bb_col = bb_fold.reshape(HIDDEN, 1)
    wh_t = w_head.astype(f32).T                                  # [N_HEAD, HIDDEN]
    bh_col = b_head.astype(f32).reshape(N_HEAD, 1)

    grid = (B, pl.cdiv(HW, tm))
    const2 = lambda b, i: (0, 0)
    pix = lambda b, i: (b, 0, i)

    sem_cm, center_cm, offset_cm, prob_cm = pl.pallas_call(
        _sigais_kernel,
        out_shape=(jax.ShapeDtypeStruct((B, NUM_CLASSES, HW), jnp.float32),
                   jax.ShapeDtypeStruct((B, 1, HW), jnp.float32),
                   jax.ShapeDtypeStruct((B, 2, HW), jnp.float32),
                   jax.ShapeDtypeStruct((B, NUM_CLASSES, HW), jnp.bfloat16)),
        grid_spec=pltpu.PrefetchScalarGridSpec(
            num_scalar_prefetch=0,
            grid=grid,
            in_specs=[
                pl.BlockSpec((None, C, tm), pix),          # image pixels
                pl.BlockSpec((None, C, tm), pix),          # map pixels
                pl.BlockSpec((HIDDEN, C), const2),         # backbone W (img), std-folded
                pl.BlockSpec((HIDDEN, C), const2),         # backbone W (map), std-folded
                pl.BlockSpec((HIDDEN, 1), const2),         # backbone bias, mean-folded
                pl.BlockSpec((N_HEAD, HIDDEN), const2),    # head weight
                pl.BlockSpec((N_HEAD, 1), const2),         # head bias
            ],
            out_specs=[
                pl.BlockSpec((None, NUM_CLASSES, tm), pix),   # sem logits   (f32)
                pl.BlockSpec((None, 1, tm), pix),             # center       (f32)
                pl.BlockSpec((None, 2, tm), pix),             # offset       (f32)
                pl.BlockSpec((None, NUM_CLASSES, tm), pix),   # semantic prob (bf16)
            ],
        ),
        compiler_params=pltpu.CompilerParams(
            dimension_semantics=("parallel", "parallel"),
            vmem_limit_bytes=vmem_limit),
    )(img, mp, wbi_t, wbm_t, bb_col, wh_t, bh_col)

    # Pure reshapes back to NCHW (free, already channel-major; no slicing).
    sem_seg = sem_cm.reshape(B, NUM_CLASSES, H, W)
    center = center_cm.reshape(B, 1, H, W)
    offset = offset_cm.reshape(B, 2, H, W)
    semantic_prob = prob_cm.reshape(B, NUM_CLASSES, H, W)     # bf16
    return sem_seg, center, offset, semantic_prob


def _reference(image, maps, pixel_mean, pixel_std, w_bi, w_bm, b_b, w_h, b_h):
    """Pure-JAX f32 reference for correctness check (NCHW)."""
    image = image.astype(jnp.float32)
    maps = maps.astype(jnp.float32)
    mean = pixel_mean.reshape(1, 3, 1, 1)
    std = pixel_std.reshape(1, 3, 1, 1)
    img_n = (image - mean) / std
    map_n = (maps - mean) / std
    feat = (jnp.einsum('bchw,cd->bdhw', img_n, w_bi)
            + jnp.einsum('bchw,cd->bdhw', map_n, w_bm)
            + b_b.reshape(1, HIDDEN, 1, 1))
    feat = jnp.maximum(feat, 0.0)
    heads = (jnp.einsum('bchw,cd->bdhw', feat, w_h)
             + b_h.reshape(1, N_HEAD, 1, 1))
    sem = heads[:, :NUM_CLASSES]
    center = heads[:, NUM_CLASSES:NUM_CLASSES + 1]
    offset = heads[:, NUM_CLASSES + 1:]
    prob = jax.nn.softmax(sem, axis=1)
    return sem, center, offset, prob


if __name__ == "__main__":
    key = jax.random.PRNGKey(0)
    k_img, k_map, k_wbi, k_wbm, k_bb, k_wh, k_bh = jax.random.split(key, 7)

    B, C, H, W = 2, 3, 16, 16
    # Raw 0-255 integer pixels (exactly representable in bf16) -> bf16 input fast path.
    image = jnp.round(jax.random.uniform(k_img, (B, C, H, W), jnp.float32) * 255.0)
    maps_in = jnp.round(jax.random.uniform(k_map, (B, C, H, W), jnp.float32) * 255.0)
    image_bf16 = image.astype(jnp.bfloat16)
    maps_bf16 = maps_in.astype(jnp.bfloat16)

    # detectron2-style ImageNet pixel stats
    pixel_mean = jnp.array([123.675, 116.28, 103.53], jnp.float32)
    pixel_std = jnp.array([58.395, 57.12, 57.375], jnp.float32)

    # deterministic synthetic parameters (1x1-conv backbone + decoder heads)
    w_bi = jax.random.normal(k_wbi, (C, HIDDEN), jnp.float32) * 0.1
    w_bm = jax.random.normal(k_wbm, (C, HIDDEN), jnp.float32) * 0.1
    b_b = jax.random.normal(k_bb, (HIDDEN,), jnp.float32) * 0.01
    w_h = jax.random.normal(k_wh, (HIDDEN, N_HEAD), jnp.float32) * 0.1
    b_h = jax.random.normal(k_bh, (N_HEAD,), jnp.float32) * 0.01

    sem, center, offset, prob = sigais_forward(
        image_bf16, maps_bf16, pixel_mean, pixel_std, w_bi, w_bm, b_b, w_h, b_h)
    jax.block_until_ready((sem, center, offset, prob))

    sem_r, center_r, offset_r, prob_r = _reference(
        image, maps_in, pixel_mean, pixel_std, w_bi, w_bm, b_b, w_h, b_h)

    assert sem.shape == (B, NUM_CLASSES, H, W) and sem.dtype == jnp.float32
    assert center.shape == (B, 1, H, W)
    assert offset.shape == (B, 2, H, W)
    assert prob.shape == (B, NUM_CLASSES, H, W) and prob.dtype == jnp.bfloat16

    # logits: folded normalization + MXU rounding -> small relative tolerance
    assert jnp.allclose(sem, sem_r, atol=5e-2, rtol=5e-3)
    assert jnp.allclose(center, center_r, atol=5e-2, rtol=5e-3)
    assert jnp.allclose(offset, offset_r, atol=5e-2, rtol=5e-3)
    # probabilities: bf16 storage + EUP approximate reciprocal -> looser tolerance
    assert jnp.allclose(prob.astype(jnp.float32), prob_r, atol=2e-2, rtol=2e-2)

    # Non-divisible pixel count (20*20 = 400): exercises the masked partial last block
    # (no wrapper pad / post-slice), the f32-input path, and the >=2-block megacore guard.
    B2, H2, W2 = 1, 20, 20
    image2 = jnp.round(jax.random.uniform(k_img, (B2, C, H2, W2), jnp.float32) * 255.0)
    maps2 = jnp.round(jax.random.uniform(k_map, (B2, C, H2, W2), jnp.float32) * 255.0)
    sem2, c2, o2, p2 = sigais_forward(
        image2, maps2, pixel_mean, pixel_std, w_bi, w_bm, b_b, w_h, b_h)
    jax.block_until_ready((sem2, c2, o2, p2))
    sem2_r, c2_r, o2_r, p2_r = _reference(
        image2, maps2, pixel_mean, pixel_std, w_bi, w_bm, b_b, w_h, b_h)
    assert sem2.shape == (B2, NUM_CLASSES, H2, W2)
    assert jnp.allclose(sem2, sem2_r, atol=5e-2, rtol=5e-3)
    assert jnp.allclose(c2, c2_r, atol=5e-2, rtol=5e-3)
    assert jnp.allclose(o2, o2_r, atol=5e-2, rtol=5e-3)
    assert jnp.allclose(p2.astype(jnp.float32), p2_r, atol=2e-2, rtol=2e-2)

    print("KERNEL_OK")
</pallas_src>

<mosaic_0001>
module attributes {stable_mosaic.version = 11 : i64} {
  func.func @_sigais_kernel(%arg0: i32, %arg1: i32, %arg2: memref<1x3x256xbf16, #tpu.memory_space<vmem>>, %arg3: memref<1x3x256xbf16, #tpu.memory_space<vmem>>, %arg4: memref<32x3xf32, #tpu.memory_space<vmem>>, %arg5: memref<32x3xf32, #tpu.memory_space<vmem>>, %arg6: memref<32x1xf32, #tpu.memory_space<vmem>>, %arg7: memref<11x32xf32, #tpu.memory_space<vmem>>, %arg8: memref<11x1xf32, #tpu.memory_space<vmem>>, %arg9: memref<1x8x256xf32, #tpu.memory_space<vmem>>, %arg10: memref<1x1x256xf32, #tpu.memory_space<vmem>>, %arg11: memref<1x2x256xf32, #tpu.memory_space<vmem>>, %arg12: memref<1x8x256xbf16, #tpu.memory_space<vmem>>) attributes {dimension_semantics = [#tpu.dimension_semantics<parallel>, #tpu.dimension_semantics<parallel>], iteration_bounds = array<i64: 2, 1>, scalar_prefetch = 0 : i64, scratch_operands = 0 : i64, tpu.core_type = #tpu.core_type<tc>, window_params = [{transform_indices = @transform_0, window_bounds = array<i64: 1, 3, 256>}, {transform_indices = @transform_1, window_bounds = array<i64: 1, 3, 256>}, {pipeline_mode = #tpu.pipeline_mode<synchronous>, transform_indices = @transform_2, window_bounds = array<i64: 32, 3>}, {pipeline_mode = #tpu.pipeline_mode<synchronous>, transform_indices = @transform_3, window_bounds = array<i64: 32, 3>}, {pipeline_mode = #tpu.pipeline_mode<synchronous>, transform_indices = @transform_4, window_bounds = array<i64: 32, 1>}, {pipeline_mode = #tpu.pipeline_mode<synchronous>, transform_indices = @transform_5, window_bounds = array<i64: 11, 32>}, {pipeline_mode = #tpu.pipeline_mode<synchronous>, transform_indices = @transform_6, window_bounds = array<i64: 11, 1>}, {transform_indices = @transform_7, window_bounds = array<i64: 1, 8, 256>}, {transform_indices = @transform_8, window_bounds = array<i64: 1, 1, 256>}, {transform_indices = @transform_9, window_bounds = array<i64: 1, 2, 256>}, {transform_indices = @transform_10, window_bounds = array<i64: 1, 8, 256>}]} {
    %c0 = arith.constant 0 : index
    %c0_0 = arith.constant 0 : index
    %c0_1 = arith.constant 0 : index
    %0 = vector.load %arg2[%c0, %c0_0, %c0_1] : memref<1x3x256xbf16, #tpu.memory_space<vmem>>, vector<1x3x256xbf16>
    %1 = vector.shape_cast %0 : vector<1x3x256xbf16> to vector<3x256xbf16>
    %2 = arith.extf %1 : vector<3x256xbf16> to vector<3x256xf32>
    %c0_2 = arith.constant 0 : index
    %c0_3 = arith.constant 0 : index
    %c0_4 = arith.constant 0 : index
    %3 = vector.load %arg3[%c0_2, %c0_3, %c0_4] : memref<1x3x256xbf16, #tpu.memory_space<vmem>>, vector<1x3x256xbf16>
    %4 = vector.shape_cast %3 : vector<1x3x256xbf16> to vector<3x256xbf16>
    %5 = arith.extf %4 : vector<3x256xbf16> to vector<3x256xf32>
    %c0_5 = arith.constant 0 : index
    %c0_6 = arith.constant 0 : index
    %6 = vector.load %arg4[%c0_5, %c0_6] : memref<32x3xf32, #tpu.memory_space<vmem>>, vector<32x3xf32>
    %cst = arith.constant dense<0.000000e+00> : vector<32x256xf32>
    %7 = tpu.matmul %6, %2, %cst {dimension_numbers = #tpu.dot_dimension_numbers<[1], [0], [0], [1], [0, 0, 1, 1], [], []>} : vector<32x3xf32>, vector<3x256xf32>, vector<32x256xf32> -> vector<32x256xf32>
    %c0_7 = arith.constant 0 : index
    %c0_8 = arith.constant 0 : index
    %8 = vector.load %arg5[%c0_7, %c0_8] : memref<32x3xf32, #tpu.memory_space<vmem>>, vector<32x3xf32>
    %cst_9 = arith.constant dense<0.000000e+00> : vector<32x256xf32>
    %9 = tpu.matmul %8, %5, %cst_9 {dimension_numbers = #tpu.dot_dimension_numbers<[1], [0], [0], [1], [0, 0, 1, 1], [], []>} : vector<32x3xf32>, vector<3x256xf32>, vector<32x256xf32> -> vector<32x256xf32>
    %10 = arith.addf %7, %9 : vector<32x256xf32>
    %c0_10 = arith.constant 0 : index
    %c0_11 = arith.constant 0 : index
    %11 = vector.load %arg6[%c0_10, %c0_11] : memref<32x1xf32, #tpu.memory_space<vmem>>, vector<32x1xf32>
    %12 = vector.broadcast %11 : vector<32x1xf32> to vector<32x256xf32>
    %13 = arith.addf %10, %12 : vector<32x256xf32>
    %cst_12 = arith.constant 0.000000e+00 : f32
    %14 = vector.broadcast %cst_12 : f32 to vector<32x256xf32>
    %15 = arith.maximumf %13, %14 : vector<32x256xf32>
    %c0_13 = arith.constant 0 : index
    %c0_14 = arith.constant 0 : index
    %16 = vector.load %arg7[%c0_13, %c0_14] : memref<11x32xf32, #tpu.memory_space<vmem>>, vector<11x32xf32>
    %cst_15 = arith.constant dense<0.000000e+00> : vector<11x256xf32>
    %17 = tpu.matmul %16, %15, %cst_15 {dimension_numbers = #tpu.dot_dimension_numbers<[1], [0], [0], [1], [0, 0, 1, 1], [], []>} : vector<11x32xf32>, vector<32x256xf32>, vector<11x256xf32> -> vector<11x256xf32>
    %c0_16 = arith.constant 0 : index
    %c0_17 = arith.constant 0 : index
    %18 = vector.load %arg8[%c0_16, %c0_17] : memref<11x1xf32, #tpu.memory_space<vmem>>, vector<11x1xf32>
    %19 = vector.broadcast %18 : vector<11x1xf32> to vector<11x256xf32>
    %20 = arith.addf %17, %19 : vector<11x256xf32>
    %21 = vector.extract_strided_slice %20 {offsets = [0, 0], sizes = [8, 256], strides = [1, 1]} : vector<11x256xf32> to vector<8x256xf32>
    %cst_18 = arith.constant dense<0xFF800000> : vector<256xf32>
    %22 = vector.multi_reduction <maximumf>, %21, %cst_18 [0] : vector<8x256xf32> to vector<256xf32>
    %23 = vector.shape_cast %22 : vector<256xf32> to vector<1x256xf32>
    %24 = vector.broadcast %23 : vector<1x256xf32> to vector<8x256xf32>
    %25 = arith.subf %21, %24 : vector<8x256xf32>
    %26 = math.exp %25 : vector<8x256xf32>
    %cst_19 = arith.constant dense<0.000000e+00> : vector<256xf32>
    %27 = vector.multi_reduction <add>, %26, %cst_19 [0] : vector<8x256xf32> to vector<256xf32>
    %28 = vector.shape_cast %27 : vector<256xf32> to vector<1x256xf32>
    %29 = tpu.reciprocal %28 {approx = true} : vector<1x256xf32> -> vector<1x256xf32>
    %30 = vector.broadcast %29 : vector<1x256xf32> to vector<8x256xf32>
    %31 = arith.mulf %26, %30 : vector<8x256xf32>
    %c0_20 = arith.constant 0 : index
    %c0_21 = arith.constant 0 : index
    %c0_22 = arith.constant 0 : index
    %32 = vector.load %arg9[%c0_20, %c0_21, %c0_22] : memref<1x8x256xf32, #tpu.memory_space<vmem>>, vector<1x8x256xf32>
    %33 = vector.shape_cast %32 : vector<1x8x256xf32> to vector<8x256xf32>
    %34 = vector.shape_cast %21 : vector<8x256xf32> to vector<1x8x256xf32>
    tpu.vector_store %arg9[%c0_20, %c0_21, %c0_22], %34 {strides = array<i32>} : memref<1x8x256xf32, #tpu.memory_space<vmem>>, vector<1x8x256xf32>,
    %35 = vector.extract_strided_slice %20 {offsets = [8, 0], sizes = [1, 256], strides = [1, 1]} : vector<11x256xf32> to vector<1x256xf32>
    %c0_23 = arith.constant 0 : index
    %c0_24 = arith.constant 0 : index
    %c0_25 = arith.constant 0 : index
    %36 = vector.load %arg10[%c0_23, %c0_24, %c0_25] : memref<1x1x256xf32, #tpu.memory_space<vmem>>, vector<1x1x256xf32>
    %37 = vector.shape_cast %36 : vector<1x1x256xf32> to vector<1x256xf32>
    %38 = vector.shape_cast %35 : vector<1x256xf32> to vector<1x1x256xf32>
    tpu.vector_store %arg10[%c0_23, %c0_24, %c0_25], %38 {strides = array<i32>} : memref<1x1x256xf32, #tpu.memory_space<vmem>>, vector<1x1x256xf32>,
    %39 = vector.extract_strided_slice %20 {offsets = [9, 0], sizes = [2, 256], strides = [1, 1]} : vector<11x256xf32> to vector<2x256xf32>
    %c0_26 = arith.constant 0 : index
    %c0_27 = arith.constant 0 : index
    %c0_28 = arith.constant 0 : index
    %40 = vector.load %arg11[%c0_26, %c0_27, %c0_28] : memref<1x2x256xf32, #tpu.memory_space<vmem>>, vector<1x2x256xf32>
    %41 = vector.shape_cast %40 : vector<1x2x256xf32> to vector<2x256xf32>
    %42 = vector.shape_cast %39 : vector<2x256xf32> to vector<1x2x256xf32>
    tpu.vector_store %arg11[%c0_26, %c0_27, %c0_28], %42 {strides = array<i32>} : memref<1x2x256xf32, #tpu.memory_space<vmem>>, vector<1x2x256xf32>,
    %43 = arith.truncf %31 : vector<8x256xf32> to vector<8x256xbf16>
    %c0_29 = arith.constant 0 : index
    %c0_30 = arith.constant 0 : index
    %c0_31 = arith.constant 0 : index
    %44 = vector.load %arg12[%c0_29, %c0_30, %c0_31] : memref<1x8x256xbf16, #tpu.memory_space<vmem>>, vector<1x8x256xbf16>
    %45 = vector.shape_cast %44 : vector<1x8x256xbf16> to vector<8x256xbf16>
    %46 = vector.shape_cast %43 : vector<8x256xbf16> to vector<1x8x256xbf16>
    tpu.vector_store %arg12[%c0_29, %c0_30, %c0_31], %46 {strides = array<i32>} : memref<1x8x256xbf16, #tpu.memory_space<vmem>>, vector<1x8x256xbf16>,
    return
  }
  func.func @transform_0(%arg0: i32, %arg1: i32) -> (i32, i32, i32) {
    %c0_i32 = arith.constant 0 : i32
    %c0_i32_0 = arith.constant 0 : i32
    return %arg0, %c0_i32, %arg1 : i32, i32, i32
  }
  func.func @transform_1(%arg0: i32, %arg1: i32) -> (i32, i32, i32) {
    %c0_i32 = arith.constant 0 : i32
    %c0_i32_0 = arith.constant 0 : i32
    return %arg0, %c0_i32, %arg1 : i32, i32, i32
  }
  func.func @transform_2(%arg0: i32, %arg1: i32) -> (i32, i32) {
    %c0_i32 = arith.constant 0 : i32
    %c0_i32_0 = arith.constant 0 : i32
    %c0_i32_1 = arith.constant 0 : i32
    return %c0_i32, %c0_i32_0 : i32, i32
  }
  func.func @transform_3(%arg0: i32, %arg1: i32) -> (i32, i32) {
    %c0_i32 = arith.constant 0 : i32
    %c0_i32_0 = arith.constant 0 : i32
    %c0_i32_1 = arith.constant 0 : i32
    return %c0_i32, %c0_i32_0 : i32, i32
  }
  func.func @transform_4(%arg0: i32, %arg1: i32) -> (i32, i32) {
    %c0_i32 = arith.constant 0 : i32
    %c0_i32_0 = arith.constant 0 : i32
    %c0_i32_1 = arith.constant 0 : i32
    return %c0_i32, %c0_i32_0 : i32, i32
  }
  func.func @transform_5(%arg0: i32, %arg1: i32) -> (i32, i32) {
    %c0_i32 = arith.constant 0 : i32
    %c0_i32_0 = arith.constant 0 : i32
    %c0_i32_1 = arith.constant 0 : i32
    return %c0_i32, %c0_i32_0 : i32, i32
  }
  func.func @transform_6(%arg0: i32, %arg1: i32) -> (i32, i32) {
    %c0_i32 = arith.constant 0 : i32
    %c0_i32_0 = arith.constant 0 : i32
    %c0_i32_1 = arith.constant 0 : i32
    return %c0_i32, %c0_i32_0 : i32, i32
  }
  func.func @transform_7(%arg0: i32, %arg1: i32) -> (i32, i32, i32) {
    %c0_i32 = arith.constant 0 : i32
    %c0_i32_0 = arith.constant 0 : i32
    return %arg0, %c0_i32, %arg1 : i32, i32, i32
  }
  func.func @transform_8(%arg0: i32, %arg1: i32) -> (i32, i32, i32) {
    %c0_i32 = arith.constant 0 : i32
    %c0_i32_0 = arith.constant 0 : i32
    return %arg0, %c0_i32, %arg1 : i32, i32, i32
  }
  func.func @transform_9(%arg0: i32, %arg1: i32) -> (i32, i32, i32) {
    %c0_i32 = arith.constant 0 : i32
    %c0_i32_0 = arith.constant 0 : i32
    return %arg0, %c0_i32, %arg1 : i32, i32, i32
  }
  func.func @transform_10(%arg0: i32, %arg1: i32) -> (i32, i32, i32) {
    %c0_i32 = arith.constant 0 : i32
    %c0_i32_0 = arith.constant 0 : i32
    return %arg0, %c0_i32, %arg1 : i32, i32, i32
  }
}

</mosaic_0001>

<bundles_post_ra>
// kernel: sigais_forward.1
= control target key start
LH: loop header
LB: loop body
LE: loop exit
PB: predicated region body
PF: predicated region fallthrough
CT: control target
= control target key end

     0   :  { %s1370_s13 = smov 0   ;;  %s1372_s14 = smov 0   ;;  %s1498_s0 = inlined_call_operand.vmem [shape: bf16[2,3,256], index: 0, kind: input, shape index: {}]   ;;  %s1499_s1 = inlined_call_operand.vmem [shape: bf16[2,3,256], index: 1, kind: input, shape index: {}]   ;;  %s1500_s2 = inlined_call_operand.vmem [shape: f32[32,3], index: 2, kind: input, shape index: {}]   ;;  %s1501_s3 = inlined_call_operand.vmem [shape: f32[32,3], index: 3, kind: input, shape index: {}]   ;;  %s1502_s4 = inlined_call_operand.vmem [shape: f32[32,1], index: 4, kind: input, shape index: {}]   ;;  %s1503_s5 = inlined_call_operand.vmem [shape: f32[11,32], index: 5, kind: input, shape index: {}]   ;;  %s1504_s6 = inlined_call_operand.vmem [shape: f32[11,1], index: 6, kind: input, shape index: {}]   ;;  %s1505_s7 = inlined_call_operand.vmem [shape: f32[2,8,256], index: 7, kind: output, shape index: {0}]   ;;  %s1506_s8 = inlined_call_operand.vmem [shape: f32[2,1,256], index: 8, kind: output, shape index: {1}]   ;;  %s1507_s9 = inlined_call_operand.vmem [shape: f32[2,2,256], index: 9, kind: output, shape index: {2}]   ;;  %s1508_s10 = inlined_call_operand.vmem [shape: bf16[2,8,256], index: 10, kind: output, shape index: {3}]  }
   0x1   :  { %s1374_s15 = smov 0  }
   0x2 LB: > { %s33_s16 = sadd.s32 1, %s1305_s14  ;;  %p1211_p0 = scmp.ge.s32.totalorder %s1309_s15, 1  ;;  %s1309_s15 = sphi %s1374_s15, %s21_s15   ;;  %s1305_s14 = sphi %s1372_s14, %s1510_s14   ;;  %s1301_s13 = sphi %s1370_s13, %s1509_s13  }
   0x3   : > { %p35_p1 = scmp.ge.s32.totalorder %s33_s16, 2  ;;  %p363_p2 = scmp.lt.s32.totalorder %s1309_s15, 3 }
   0x5   : > { %s1512_s16 = smov (%p35_p1, %s33_s16), 0  ;;  %p364_p3 = pnand %p1211_p0, %p363_p2 }
   0x6   : > { %p445_p4 = scmp.lt.s32.totalorder (!%p364_p3), %s1301_s13, 1 }
   0x7   : > { %367 = sbr.rel (%p364_p3) target bundleno = 505 (0x1f9), region = 48 }
   0xc   : > { %v1311_v0 = vmov 0.0   ;;  %s1514_s13 = smov (!%p445_p4, %s1301_s13), 1  ;;  %v1312_v1 = vmov 0   ;;  %v732_v2 = vld [vmem:[%s1502_s4 + $0x8] sm:$0xff]  ;;  %v734_v3 = vld [vmem:[%s1502_s4 + $0x18] sm:$0xff]  ;;  %v731_v4 = vld [vmem:[%s1502_s4] sm:$0xff] }
   0xd   : > { %617 = vmatprep.mubr.f32.mxu1 %v1311_v0  ;;  %599 = vmatprep.mubr.f32.mxu0 %v1311_v0  ;;  %s1399_s21 = sshll.u32 %s1514_s13, 2  ;;  %v733_v5 = vld [vmem:[%s1502_s4 + $0x10] sm:$0xff]  ;;  %vm530_vm0 = vcmask 1042432   ;;  %v514_v11 = vld [vmem:[%s1501_s3 + $0x18] sm:$0xff]  ;;  %vm517_vm1 = vcmask 23552   ;;  %v511_v13 = vld [vmem:[%s1501_s3] sm:$0xff] }
   0xe   : > { %1278 = vset.pattern.permute.xlu1 %v1312_v1  ;;  %1277 = vset.pattern.permute.xlu0 %v1312_v1  ;;  %s462_s24 = scalar_lea.vmem %s1499_s1, %s1399_s21  ;;  %s452_s11 = scalar_lea.vmem %s1498_s0, %s1399_s21  ;;  %v773_v14 = vld [vmem:[%s1504_s6] sm:$0xff]  ;;  %v774_v15 = vld [vmem:[%s1504_s6 + $0x8] sm:$0x7]  ;;  %v513_v19 = vld [vmem:[%s1501_s3 + $0x10] sm:$0xff]  ;;  %vm785_vm2 = vcmask 261120   ;;  %vm936_vm3 = vcmask 1040384  }
   0xf   : > { %742 = vperm.xlu1 %1278, %v732_v2   ;;  %752 = vperm.xlu0 %1277, %v734_v3   ;;  %v505_v6 = vld [vmem:[%s462_s24] sm:$0xf]  ;;  %v512_v17 = vld [vmem:[%s1501_s3 + $0x8] sm:$0xff]  ;;  %v509_v20 = vld [vmem:[%s1500_s2 + $0x10] sm:$0xff]  ;;  %s1243_s26 = sshll.u32 %s1514_s13, 4  ;;  %vm937_vm4 = vcmask 1042434   ;;  %s491_s20 = scalar_lea.vmem %s1507_s9, %s1399_s21 }
  0x10   : > { %v506_v7 = vunpack.c.l.bf16 %v505_v6  ;;  %v503_v8 = vld [vmem:[%s452_s11] sm:$0xf]  ;;  %v508_v18 = vld [vmem:[%s1500_s2 + $0x8] sm:$0xff]  ;;  %v510_v21 = vld [vmem:[%s1500_s2 + $0x18] sm:$0xff]  ;;  %s472_s29 = scalar_lea.vmem %s1505_s7, %s1243_s26  ;;  %vm939_vm6 = vcmask 1044484   ;;  %s1218_s30 = sshll.u32 %s1514_s13, 1 }
  0x11   : > { %v504_v9 = vunpack.c.l.bf16 %v503_v8  ;;  %v507_v16 = vld [vmem:[%s1500_s2] sm:$0xff]  ;;  %v1314_v8 = vmov 1983009808   ;;  %vm938_vm5 = vmor %vm936_vm3, %vm937_vm4  ;;  %vm941_vm7 = vcmask 1046534   ;;  %s481_s17 = scalar_lea.vmem %s1506_s8, %s1218_s30  ;;  %s1245_s21 = sshll.u32 %s1514_s13, 3 }
  0x12   : > { %v516_v10 = vcombine.high %v506_v7, %v506_v7  ;;  %v771_v3 = vld [vmem:[%s1503_s5] sm:$0xff]  ;;  %vm940_vm8 = vmor %vm938_vm5, %vm939_vm6  ;;  %s501_s24 = scalar_lea.vmem %s1508_s10, %s1245_s21 }
  0x13   : > { %737 = vperm.xlu1 %1278, %v731_v4   ;;  %747 = vperm.xlu0 %1277, %v733_v5   ;;  %v625_v12 = vcombine.high %v504_v9, %v504_v9  ;;  %v772_v4 = vld [vmem:[%s1503_s5 + $0x8] sm:$0x7]  ;;  %v1313_v5 = vmov 1966171168   ;;  %vm942_vm10 = vmor %vm940_vm8, %vm941_vm7 }
  0x14   : > { %1247 = vmatprep.subr.msk.mxu1 %vm530_vm0, %v516_v10  ;;  %1223 = vmatprep.subr.msk.mxu0 %vm530_vm0, %v516_v10  ;;  %v909_v6 = vunpack.c.l.s4 %v1313_v5 }
  0x15   : > { %1248 = vmatpush1.msk.msra.mxu1 %vm530_vm0, %v506_v7  ;;  %1224 = vmatpush1.msk.msra.mxu0 %vm530_vm0, %v506_v7  ;;  %v911_v7 = vlaneseq }
  0x16   : > { %1228 = vmatmul.mubr.msk.f32.vlgmr.msra.gmra.mxu1 %vm517_vm1, %v514_v11  ;;  %1229 = vmatprep.subr.msk.mxu1 %vm530_vm0, %v625_v12 }
  0x17   : > { %1230 = vmatpush1.msk.msra.mxu1 %vm530_vm0, %v504_v9  ;;  %706 = vmatprep.mubr.f32.mxu1 %v1311_v0  ;;  %v929_v9 = vunpack.c.l.s4 %v1314_v8  ;;  %vm925_vm9 = vcmp.lt.s32.totalorder %v911_v7, 256 }
  0x18   : > { %1225 = vmatmul.mubr.msk.f32.vlgmr.msra.gmra.mxu0 %vm517_vm1, %v511_v13  ;;  %777 = vperm.xlu0 %1277, %v773_v14   ;;  %v912_v14 = vshrl.u32 %v911_v7, 7 }
  0x19   : > { %605 = vmatprep.mubr.f32.mxu0 %v1311_v0  ;;  %782 = vperm.xlu1 %1278, %v774_v15   ;;  %v930_v15 = vunpack.c.0.s8 %v929_v9 }
  0x1a   : > { %1231 = vmatmul.mubr.msk.f32.vlgmr.msra.gmra.mxu1 %vm517_vm1, %v507_v16 }
  0x1b   : > { %712 = vmatprep.mubr.f32.mxu1 %v1311_v0 }
  0x1c   : > { %1226 = vmatmul.mubr.msk.f32.gmra.mxu0 %vm517_vm1, %v512_v17 }
  0x1d   : > { %611 = vmatprep.mubr.f32.mxu0 %v1311_v0 }
  0x1e   : > { %1232 = vmatmul.mubr.msk.f32.gmra.mxu1 %vm517_vm1, %v508_v18 }
  0x1f   : > { %718 = vmatprep.mubr.f32.mxu1 %v1311_v0 }
  0x20   : > { %1227 = vmatmul.mubr.msk.f32.gmra.mxu0 %vm517_vm1, %v513_v19 }
  0x21   : > { %856 = vmatprep.mubr.f32.mxu0 %v1311_v0 }
  0x22   : > { %1233 = vmatmul.mubr.msk.f32.gmra.mxu1 %vm517_vm1, %v509_v20 }
  0x23   : > { %724 = vmatprep.mubr.f32.mxu1 %v1311_v0 }
  0x26   : > { %1234 = vmatmul.mubr.msk.f32.gmra.mxu1 %vm517_vm1, %v510_v21 }
  0x8a   : > { %v753_v34 = vpop.permute.xlu0 %752  ;;  %v743_v38 = vpop.permute.xlu1 %742 }
  0x8e   : > { %v748_v44 = vpop.permute.xlu0 %747  ;;  %v738_v53 = vpop.permute.xlu1 %737 }
  0x93   : > { %v778_v10 = vpop.permute.xlu0 %777 }
  0x94   : > { %v783_v21 = vpop.permute.xlu1 %782 }
  0xd6   : > { %v619_v22 = vpop.f32.mrf.mxu1 }
  0xd8   : > { %v621_v23 = vpop.f32.mrf.mxu1  ;;  %v601_v24 = vpop.f32.mrf.mxu0 }
  0xda   : > { %v708_v25 = vpop.f32.mrf.mxu1  ;;  %v603_v26 = vpop.f32.mrf.mxu0 }
  0xdb   : > { %v709_v51 = vadd.f32 %v708_v25, %v601_v24  ;;  %v933_v24 = vsub.s32 %v930_v15, %v912_v14 }
  0xdc   : > { %v710_v27 = vpop.f32.mrf.mxu1  ;;  %v607_v28 = vpop.f32.mrf.mxu0 }
  0xdd   : > { %v711_v48 = vadd.f32 %v710_v27, %v603_v26  ;;  %v755_v60 = vadd.f32 %v738_v53, %v709_v51 }
  0xde   : > { %v714_v29 = vpop.f32.mrf.mxu1  ;;  %v609_v30 = vpop.f32.mrf.mxu0 }
  0xdf   : > { %v715_v46 = vadd.f32 %v714_v29, %v607_v28  ;;  %v756_v58 = vadd.f32 %v738_v53, %v711_v48  ;;  %v763_v2 = vmax.f32 %v755_v60, 0.0 }
  0xe0   : > { %v716_v31 = vpop.f32.mrf.mxu1  ;;  %v613_v32 = vpop.f32.mrf.mxu0 }
  0xe1   : > { %v717_v43 = vadd.f32 %v716_v31, %v609_v30  ;;  %v757_v56 = vadd.f32 %v743_v38, %v715_v46  ;;  %v764_v1 = vmax.f32 %v756_v58, 0.0 }
  0xe2   : > { %v720_v33 = vpop.f32.mrf.mxu1  ;;  %v615_v35 = vpop.f32.mrf.mxu0 }
  0xe3   : > { %v721_v41 = vadd.f32 %v720_v33, %v613_v32  ;;  %v758_v54 = vadd.f32 %v743_v38, %v717_v43  ;;  %v765_v63 = vmax.f32 %v757_v56, 0.0 }
  0xe4   : > { %v722_v36 = vpop.f32.mrf.mxu1 }
  0xe5   : > { %v723_v39 = vadd.f32 %v722_v36, %v615_v35  ;;  %v759_v52 = vadd.f32 %v748_v44, %v721_v41  ;;  %v766_v62 = vmax.f32 %v758_v54, 0.0 }
  0xe6   : > { %v726_v37 = vpop.f32.mrf.mxu1 }
  0xe7   : > { %v727_v40 = vadd.f32 %v726_v37, %v619_v22  ;;  %v760_v49 = vadd.f32 %v748_v44, %v723_v39  ;;  %v767_v61 = vmax.f32 %v759_v52, 0.0 }
  0xe8   : > { %v728_v42 = vpop.f32.mrf.mxu1 }
  0xe9   : > { %v729_v45 = vadd.f32 %v728_v42, %v621_v23  ;;  %v761_v47 = vadd.f32 %v753_v34, %v727_v40  ;;  %v768_v59 = vmax.f32 %v760_v49, 0.0 }
  0xeb   : > { %v762_v50 = vadd.f32 %v753_v34, %v729_v45  ;;  %v769_v57 = vmax.f32 %v761_v47, 0.0 }
  0xed   : > { %v770_v55 = vmax.f32 %v762_v50, 0.0 }
  0xef   : > { %816 = vmatprep.subr.mxu0 %v770_v55 }
  0xf0   : > { %817 = vmatpush1.msra.mxu0 %v769_v57 }
  0xf1   : > { %818 = vmatprep.subr.mxu0 %v768_v59 }
  0xf2   : > { %819 = vmatpush1.msra.mxu0 %v767_v61 }
  0xf3   : > { %820 = vmatprep.subr.mxu0 %v766_v62 }
  0xf4   : > { %821 = vmatpush1.msra.mxu0 %v765_v63 }
  0xf5   : > { %822 = vmatprep.subr.mxu0 %v764_v1 }
  0xf6   : > { %823 = vmatpush1.msra.mxu0 %v763_v2 }
  0xf7   : > { %1235 = vmatmul.mubr.msk.f32.vlgmr.msra.gmra.mxu0 %vm785_vm2, %v771_v3 }
  0xf8   : > { %862 = vmatprep.mubr.f32.mxu0 %v1311_v0  ;;  %v910_v0 = vunpack.c.0.s8 %v909_v6 }
  0xfa   : > { %v913_v23 = vsub.s32 %v910_v0, %v912_v14 }
  0xfb   : > { %1236 = vmatmul.mubr.msk.f32.gmra.mxu0 %vm785_vm2, %v772_v4 }
 0x1b7   : > { %v858_v11 = vpop.f32.mrf.mxu0 }
 0x1b8   : > { %v859_v12 = vadd.f32 %v858_v11, %v778_v10 }
 0x1b9   : > { %v860_v13 = vpop.f32.mrf.mxu0 }
 0x1ba   : > { %v869_v16 = vrot.slane %v859_v12, 4  ;;  %903 = vst [vmem:[%s472_s29] sm:$0xff] %v859_v12  ;;  %v861_v17 = vadd.f32 %v860_v13, %v778_v10 }
 0x1bb   : > { %v864_v18 = vpop.f32.mrf.mxu0 }
 0x1bc   : > { %v870_v19 = vmax.f32 %v859_v12, %v869_v16  ;;  %v875_v20 = vrot.slane %v861_v17, 4  ;;  %904 = vst [vmem:[%s472_s29 + $0x8] sm:$0xff] %v861_v17  ;;  %v865_v27 = vadd.f32 %v864_v18, %v783_v21 }
 0x1bd   : > { %v866_v22 = vpop.f32.mrf.mxu0 }
 0x1be   : > { %v871_v25 = vrot.slane %v870_v19, 2  ;;  %v876_v26 = vmax.f32 %v861_v17, %v875_v20  ;;  %v867_v28 = vadd.f32 %v866_v22, %v783_v21 }
 0x1c0   : > { %v872_v29 = vmax.f32 %v870_v19, %v871_v25  ;;  %v877_v30 = vrot.slane %v876_v26, 2  ;;  %v907_v31 = vcombine.low %v865_v27, %v867_v28 }
 0x1c2   : > { %v873_v32 = vrot.slane %v872_v29, 1  ;;  %v878_v33 = vmax.f32 %v876_v26, %v877_v30  ;;  %v914_v34 = vrot.slane %v907_v31, %v913_v23  ;;  %v934_v35 = vrot.slane %v907_v31, %v933_v24 }
 0x1c4   : > { %v874_v36 = vmax.f32 %v872_v29, %v873_v32  ;;  %v879_v37 = vrot.slane %v878_v33, 1  ;;  %v921_v38 = vrot.slane %v914_v34, %v913_v23  ;;  %v935_v39 = vcombine.high %v934_v35, %v934_v35 }
 0x1c5   : > { %v1237_v42 = vrot.slane %v934_v35, 9 }
 0x1c6   : > { %v881_v40 = vsub.f32 %v859_v12, %v874_v36  ;;  %v880_v41 = vmax.f32 %v878_v33, %v879_v37  ;;  %927 = vst.msk [vmem:[%s481_s17] sm:$0x3] %vm925_vm9, %v921_v38  ;;  %v945_v43 = vrot.slane %v935_v39, 7 }
 0x1c8   : > { %v883_v44 = vmul.f32 1.442695, %v881_v40  ;;  %v882_v45 = vsub.f32 %v861_v17, %v880_v41  ;;  %v946_v46 = vsel %vm942_vm10, %v1237_v42, %v945_v43 }
 0x1c9   : > { %948 = vst [vmem:[%s491_s20] sm:$0xf] %v946_v46 }
 0x1ca   : > { %1279 = vpow2.f32 %v883_v44  ;;  %v885_v47 = vmul.f32 1.442695, %v882_v45 }
 0x1cc   : > { %1281 = vpow2.f32 %v885_v47 }
 0x1d7   : > { %v1280_v48 = vpop.eup %1279 }
 0x1d8   : > { %v887_v49 = vrot.slane %v1280_v48, 4 }
 0x1d9   : > { %v1282_v50 = vpop.eup %1281 }
 0x1da   : > { %v888_v51 = vadd.f32 %v1280_v48, %v887_v49  ;;  %v893_v52 = vrot.slane %v1282_v50, 4 }
 0x1dc   : > { %v889_v53 = vrot.slane %v888_v51, 2  ;;  %v894_v54 = vadd.f32 %v1282_v50, %v893_v52 }
 0x1de   : > { %v890_v55 = vadd.f32 %v889_v53, %v888_v51  ;;  %v895_v56 = vrot.slane %v894_v54, 2 }
 0x1e0   : > { %v891_v57 = vrot.slane %v890_v55, 1  ;;  %v896_v58 = vadd.f32 %v895_v56, %v894_v54 }
 0x1e2   : > { %v892_v59 = vadd.f32 %v891_v57, %v890_v55  ;;  %v897_v60 = vrot.slane %v896_v58, 1 }
 0x1e4   : > { %1283 = vrcp.f32 %v892_v59  ;;  %v898_v61 = vadd.f32 %v897_v60, %v896_v58 }
 0x1e6   : > { %1285 = vrcp.f32 %v898_v61 }
 0x1f1   : > { %v1284_v62 = vpop.eup %1283 }
 0x1f2   : > { %v901_v1 = vmul.f32 %v1284_v62, %v1280_v48 }
 0x1f3   : > { %v1286_v63 = vpop.eup %1285 }
 0x1f4   : > { %v902_v2 = vmul.f32 %v1286_v63, %v1282_v50 }
 0x1f6   : > { %v1246_v3 = vpack.c.bf16 %v902_v2, %v901_v1 }
 0x1f8   : > { %957 = vst [vmem:[%s501_s24] sm:$0xff] %v1246_v3 }
 0x1f9 PF: > { %s21_s15 = sadd.s32 1, %s1309_s15   ;;  %s1509_s13 = smov %s1305_s14 }
 0x1fa   : > { %p18_p5 = scmp.ge.s32.totalorder %s21_s15, 4   ;;  %s1510_s14 = smov %s1512_s16 }
 0x1fc   :  { %20 = sbr.rel (!%p18_p5) target bundleno = 2 (0x2), region = 117 }

</bundles_post_ra>
